<compile_context>
chip_gen: v5e
topology: v5e:2x2
jax: 0.10.0
libtpu: 0.0.40
codegen_flags: <defaults>
</compile_context>

<pallas_src>
import math
import functools

import jax
import jax.numpy as jnp
from jax import lax
from jax.experimental import pallas as pl
from jax.experimental.pallas import tpu as pltpu


# 48 MiB scoped VMEM: leaves headroom on v7x (64 MiB physical) and is plenty
# for the tile sizes below on v5e/v6e (128 MiB physical).
_VMEM_LIMIT_BYTES = 48 * 1024 * 1024

# Linear tile targets.  With bf16 operands, (512 x 1024)-class blocks plus the
# f32 accumulator stay well inside the 48 MiB scoped budget while amortizing
# the ~0.35 us per-grid-step overhead.
_TM, _TN, _TK = 512, 1024, 1024

# Attention query-tile target (rows per grid step).
_TQ = 256


# ----------------------------- Pallas kernels -----------------------------

def _linear_kernel(x_ref, w_ref, b_ref, o_ref, acc_ref):
    """One (tm, tn) output tile; K is the innermost (reduction) grid axis.
    x and w are already bf16 (cast once outside), accumulation is f32."""
    k = pl.program_id(2)

    @pl.when(k == 0)
    def _():
        acc_ref[...] = jnp.zeros_like(acc_ref)

    acc_ref[...] += jnp.dot(x_ref[...], w_ref[...],
                            preferred_element_type=jnp.float32)

    @pl.when(k == pl.num_programs(2) - 1)
    def _():
        o_ref[...] = (acc_ref[...] + b_ref[...]).astype(o_ref.dtype)


def _make_attn_proj_kernel(emb_size: int, num_heads: int, seq_len: int, tq: int):
    """Fused multi-head attention + output projection for one (batch, q-block).

    qkv_ref : (1, N, 3E) bf16, columns laid out as [Q | K | V], each (h, d).
    pw_ref  : (E, E)  bf16 pre-transposed projection weight.
    pb_ref  : (1, E)  f32 projection bias.
    o_ref   : (1, tq, E) f32 — written exactly once (lane-dense slab).
    attn_sc : (tq, E) bf16 VMEM scratch assembling the per-head outputs.
    """
    E, H, N, TQ = emb_size, num_heads, seq_len, tq
    D = E // H
    inv_scale = 1.0 / math.sqrt(float(E))

    def kernel(qkv_ref, pw_ref, pb_ref, o_ref, attn_sc):
        qi = pl.program_id(1)
        q0 = qi * TQ
        if TQ % 8 == 0:
            q0 = pl.multiple_of(q0, 8)

        # TODO(synk): per-head lane slices are D-wide (often 64); if profiling
        # shows relayout copies, pad D to 128 in the weight permutation.
        for h in range(H):                       # static unroll, H compile-time
            q = qkv_ref[0, pl.ds(q0, TQ), h * D:(h + 1) * D]                 # (TQ, D) bf16
            k = qkv_ref[0, :, E + h * D:E + (h + 1) * D]                     # (N, D)  bf16
            v = qkv_ref[0, :, 2 * E + h * D:2 * E + (h + 1) * D]             # (N, D)  bf16

            # energy = q @ k^T : bf16 MXU inputs, f32 accumulation.  (TQ, N)
            energy = lax.dot_general(
                q, k, (((1,), (1,)), ((), ())),
                preferred_element_type=jnp.float32)

            # softmax over keys FIRST, then * 1/sqrt(E) (module quirk kept).
            # Softmax math stays f32 (portable to v5e: no bf16 VPU/EUP).
            m = jnp.max(energy, axis=-1, keepdims=True)
            e = jnp.exp(energy - m)
            denom = jnp.sum(e, axis=-1, keepdims=True)
            # approx reciprocal -> EUP slot; fold the 1/sqrt(E) scale into it.
            att = e * (pl.reciprocal(denom, approx=True) * inv_scale)

            out_h = jnp.dot(att.astype(jnp.bfloat16), v,
                            preferred_element_type=jnp.float32)              # (TQ, D)
            # cheap partial-lane store to VMEM scratch; bounds per-head
            # temporaries' live ranges and keeps the HBM store lane-dense.
            attn_sc[:, h * D:(h + 1) * D] = out_h.astype(jnp.bfloat16)

        # fused output projection on the resident slab, then a single
        # lane-dense (TQ, E) store.
        proj = jnp.dot(attn_sc[...], pw_ref[...],
                       preferred_element_type=jnp.float32)                   # (TQ, E)
        o_ref[0] = (proj + pb_ref[...]).astype(o_ref.dtype)

    return kernel


# ------------------------------ tile helpers -------------------------------

def _tile_m(dim, target=_TM):
    return dim if dim <= target else target


def _tile_n(dim, target=_TN):
    """Prefer a divisor of dim that is a multiple of 256 (then 128) so no
    half-masked trailing N block is produced; fall back to a 128-multiple."""
    if dim <= target:
        return dim
    for step in (256, 128):
        t = (target // step) * step
        while t >= step:
            if dim % t == 0:
                return t
            t -= step
    return (target // 128) * 128          # masked trailing block (rare)


def _tile_k(dim, target=_TK):
    """Reduction axis must divide evenly (padding would pollute the acc)."""
    if dim <= target:
        return dim
    for step in (256, 128):
        t = (target // step) * step
        while t >= step:
            if dim % t == 0:
                return t
            t -= step
    # TODO(synk): fallback keeps the full K resident; for very large awkward K
    # this could exceed the VMEM budget (robustness, not numerics).
    return dim


def _tile_q(seq_len, target=_TQ):
    """Largest 8-multiple divisor of N that is <= target; else no tiling."""
    if seq_len <= target:
        return seq_len
    for t in range(target, 7, -1):
        if t % 8 == 0 and seq_len % t == 0:
            return t
    return seq_len


# ------------------------------ JAX wrappers -------------------------------

def pallas_linear(x2d, wT, b2d, out_dtype=jnp.bfloat16):
    """x2d: (M, K) bf16; wT: (K, Nout) bf16 (pre-transposed); b2d: (1, Nout) f32."""
    M, K = x2d.shape
    K2, Nout = wT.shape
    assert K2 == K
    tm = _tile_m(M)
    tn = _tile_n(Nout)
    tk = _tile_k(K)
    grid = (pl.cdiv(M, tm), pl.cdiv(Nout, tn), pl.cdiv(K, tk))

    cost = pl.CostEstimate(
        flops=2 * M * K * Nout,
        transcendentals=0,
        bytes_accessed=(M * K * x2d.dtype.itemsize
                        + K * Nout * wT.dtype.itemsize
                        + M * Nout * jnp.dtype(out_dtype).itemsize))

    return pl.pallas_call(
        _linear_kernel,
        out_shape=jax.ShapeDtypeStruct((M, Nout), out_dtype),
        grid=grid,
        in_specs=[
            pl.BlockSpec((tm, tk), lambda i, j, k: (i, k)),
            pl.BlockSpec((tk, tn), lambda i, j, k: (k, j)),
            pl.BlockSpec((1, tn), lambda i, j, k: (0, j)),
        ],
        out_specs=pl.BlockSpec((tm, tn), lambda i, j, k: (i, j)),
        scratch_shapes=[pltpu.VMEM((tm, tn), jnp.float32)],
        compiler_params=pltpu.CompilerParams(
            dimension_semantics=("parallel", "parallel", "arbitrary"),
            vmem_limit_bytes=_VMEM_LIMIT_BYTES),
        cost_estimate=cost,
    )(x2d, wT, b2d)


def pallas_attention_proj(qkv, proj_wT, proj_b, emb_size, num_heads):
    """Fused attention + output projection.

    qkv: (B, N, 3E) bf16 with [Q|K|V] column layout -> (B, N, E) f32 final out.
    """
    B, N, threeE = qkv.shape
    E, H = emb_size, num_heads
    D = E // H
    assert threeE == 3 * E and E % H == 0
    tq = _tile_q(N)
    nq = N // tq
    # TODO(synk): for long sequences (N >~ 1k on v7x, ~2k on v5e/v6e) switch to
    # a flash-style KV-tiled online softmax; here the bf16 (N, 3E) slab plus a
    # per-head f32 (tq, N) energy tile live in VMEM, fine at ViT scale.
    cost = pl.CostEstimate(
        flops=int(B * (4 * H * N * N * D + 2 * N * E * E)),
        transcendentals=int(B * H * N * N),
        bytes_accessed=int(B * N * 3 * E * qkv.dtype.itemsize
                           + E * E * proj_wT.dtype.itemsize
                           + B * N * E * 4))
    return pl.pallas_call(
        _make_attn_proj_kernel(E, H, N, tq),
        out_shape=jax.ShapeDtypeStruct((B, N, E), jnp.float32),
        grid=(B, nq),
        in_specs=[
            pl.BlockSpec((1, N, 3 * E), lambda b, qi: (b, 0, 0)),
            pl.BlockSpec((E, E), lambda b, qi: (0, 0)),
            pl.BlockSpec((1, E), lambda b, qi: (0, 0)),
        ],
        out_specs=pl.BlockSpec((1, tq, E), lambda b, qi: (b, qi, 0)),
        scratch_shapes=[pltpu.VMEM((tq, E), jnp.bfloat16)],
        compiler_params=pltpu.CompilerParams(
            dimension_semantics=("parallel", "parallel"),
            vmem_limit_bytes=_VMEM_LIMIT_BYTES),
        cost_estimate=cost,
    )(qkv, proj_wT, proj_b)


def prepare_params(params, num_heads):
    """One-time parameter prep: permute qkv rows so the projection output is
    contiguous [Q | K | V] (each ordered (h, d)) instead of the module's
    interleaved (h, d, qkv) layout; pre-transpose weights to (in, out) and cast
    them to bf16 (MXU inputs); biases stay f32."""
    E = params["proj_w"].shape[0]
    H = num_heads
    D = E // H
    # original row index for (h, d, s) is h*D*3 + d*3 + s ; new order is (s, h, d).
    perm = jnp.transpose(jnp.arange(3 * E).reshape(H, D, 3), (2, 0, 1)).reshape(-1)
    return {
        "qkv_wT": jnp.transpose(params["qkv_w"][perm]).astype(jnp.bfloat16),  # (E, 3E)
        "qkv_b": params["qkv_b"][perm].reshape(1, 3 * E).astype(jnp.float32),
        "proj_wT": jnp.transpose(params["proj_w"]).astype(jnp.bfloat16),      # (E, E)
        "proj_b": params["proj_b"].reshape(1, E).astype(jnp.float32),
    }


def multi_head_attention(x, prepared, num_heads):
    """Forward pass matching the PyTorch MultiHeadAttention module (mask=None)."""
    B, N, E = x.shape
    # bf16 activations into the qkv projection (halves DMA bytes & VMEM blocks).
    x_bf16 = x.astype(jnp.bfloat16).reshape(B * N, E)
    # qkv projection -> (B, N, 3E) bf16 with [Q | K | V] columns (no strided split).
    qkv = pallas_linear(x_bf16, prepared["qkv_wT"], prepared["qkv_b"],
                        out_dtype=jnp.bfloat16).reshape(B, N, 3 * E)
    # fused per-(batch, q-block) attention over all heads + output projection.
    out = pallas_attention_proj(qkv, prepared["proj_wT"], prepared["proj_b"],
                                emb_size=E, num_heads=num_heads)       # (B, N, E) f32
    return out


# --------------------------- reference (pure JAX) ---------------------------

def reference_mha(x, params, num_heads):
    B, N, E = x.shape
    H = num_heads
    D = E // H
    qkv_out = x @ params["qkv_w"].T + params["qkv_b"]
    qkv5 = qkv_out.reshape(B, N, H, D, 3)
    q = jnp.transpose(qkv5[..., 0], (0, 2, 1, 3))
    k = jnp.transpose(qkv5[..., 1], (0, 2, 1, 3))
    v = jnp.transpose(qkv5[..., 2], (0, 2, 1, 3))
    energy = jnp.einsum('bhqd,bhkd->bhqk', q, k)
    att = jax.nn.softmax(energy, axis=-1) / math.sqrt(E)
    out = jnp.einsum('bhal,bhlv->bhav', att, v)
    out = jnp.transpose(out, (0, 2, 1, 3)).reshape(B, N, E)
    return out @ params["proj_w"].T + params["proj_b"]


# ---------------------------------- main ------------------------------------

if __name__ == "__main__":
    # Small shapes consistent with the module: emb_size=32, num_heads=4.
    B, N, E, H = 2, 8, 32, 4

    key = jax.random.PRNGKey(0)
    k_x, k_qw, k_qb, k_pw, k_pb = jax.random.split(key, 5)

    x = jax.random.normal(k_x, (B, N, E), dtype=jnp.float32)

    # Deterministic parameter init (PyTorch Linear weight layout: (out, in)).
    bound = 1.0 / math.sqrt(E)
    params = {
        "qkv_w":  jax.random.uniform(k_qw, (3 * E, E), jnp.float32, -bound, bound),
        "qkv_b":  jax.random.uniform(k_qb, (3 * E,),   jnp.float32, -bound, bound),
        "proj_w": jax.random.uniform(k_pw, (E, E),     jnp.float32, -bound, bound),
        "proj_b": jax.random.uniform(k_pb, (E,),       jnp.float32, -bound, bound),
    }

    prepared = prepare_params(params, num_heads=H)
    fwd = jax.jit(functools.partial(multi_head_attention, num_heads=H))

    out = jax.block_until_ready(fwd(x, prepared))
    ref = jax.block_until_ready(reference_mha(x, params, num_heads=H))

    assert out.shape == (B, N, E)
    # bf16 MXU operands / bf16 intermediates with f32 accumulation -> compare
    # at a bf16-appropriate tolerance against the pure-f32 reference.
    assert jnp.allclose(out, ref, rtol=1e-2, atol=1e-2), \
        ("max abs err", float(jnp.max(jnp.abs(out - ref))))

    print("KERNEL_OK")
</pallas_src>

<mosaic_0001>
module attributes {stable_mosaic.version = 11 : i64} {
  func.func @_linear_kernel(%arg0: i32, %arg1: i32, %arg2: i32, %arg3: memref<16x32xbf16, #tpu.memory_space<vmem>>, %arg4: memref<32x96xbf16, #tpu.memory_space<vmem>>, %arg5: memref<1x96xf32, #tpu.memory_space<vmem>>, %arg6: memref<16x96xbf16, #tpu.memory_space<vmem>>, %arg7: memref<16x96xf32, #tpu.memory_space<vmem>>) attributes {dimension_semantics = [#tpu.dimension_semantics<parallel>, #tpu.dimension_semantics<parallel>, #tpu.dimension_semantics<arbitrary>], iteration_bounds = array<i64: 1, 1, 1>, scalar_prefetch = 0 : i64, scratch_operands = 1 : i64, tpu.core_type = #tpu.core_type<tc>, window_params = [{transform_indices = @transform_0, window_bounds = array<i64: 16, 32>}, {transform_indices = @transform_1, window_bounds = array<i64: 32, 96>}, {transform_indices = @transform_2, window_bounds = array<i64: 1, 96>}, {transform_indices = @transform_3, window_bounds = array<i64: 16, 96>}]} {
    %c0_i32 = arith.constant 0 : i32
    %0 = arith.cmpi eq, %arg2, %c0_i32 : i32
    %1 = arith.extui %0 : i1 to i32
    %c0_i32_0 = arith.constant 0 : i32
    %2 = arith.cmpi ne, %1, %c0_i32_0 : i32
    scf.if %2 {
      %cst_10 = arith.constant 0.000000e+00 : f32
      %12 = vector.broadcast %cst_10 : f32 to vector<16x96xf32>
      %c0_11 = arith.constant 0 : index
      %c0_12 = arith.constant 0 : index
      %13 = vector.load %arg7[%c0_11, %c0_12] : memref<16x96xf32, #tpu.memory_space<vmem>>, vector<16x96xf32>
      tpu.vector_store %arg7[%c0_11, %c0_12], %12 {strides = array<i32>} : memref<16x96xf32, #tpu.memory_space<vmem>>, vector<16x96xf32>,
    } else {
    }
    %c0 = arith.constant 0 : index
    %c0_1 = arith.constant 0 : index
    %3 = vector.load %arg7[%c0, %c0_1] : memref<16x96xf32, #tpu.memory_space<vmem>>, vector<16x96xf32>
    %c0_2 = arith.constant 0 : index
    %c0_3 = arith.constant 0 : index
    %4 = vector.load %arg3[%c0_2, %c0_3] : memref<16x32xbf16, #tpu.memory_space<vmem>>, vector<16x32xbf16>
    %c0_4 = arith.constant 0 : index
    %c0_5 = arith.constant 0 : index
    %5 = vector.load %arg4[%c0_4, %c0_5] : memref<32x96xbf16, #tpu.memory_space<vmem>>, vector<32x96xbf16>
    %cst = arith.constant dense<0.000000e+00> : vector<16x96xf32>
    %6 = tpu.matmul %4, %5, %cst {dimension_numbers = #tpu.dot_dimension_numbers<[1], [0], [0], [1], [0, 0, 1, 1], [], []>} : vector<16x32xbf16>, vector<32x96xbf16>, vector<16x96xf32> -> vector<16x96xf32>
    %7 = arith.addf %3, %6 : vector<16x96xf32>
    %c0_6 = arith.constant 0 : index
    %c0_7 = arith.constant 0 : index
    %8 = vector.load %arg7[%c0_6, %c0_7] : memref<16x96xf32, #tpu.memory_space<vmem>>, vector<16x96xf32>
    tpu.vector_store %arg7[%c0_6, %c0_7], %7 {strides = array<i32>} : memref<16x96xf32, #tpu.memory_space<vmem>>, vector<16x96xf32>,
    %c0_i32_8 = arith.constant 0 : i32
    %9 = arith.cmpi eq, %arg2, %c0_i32_8 : i32
    %10 = arith.extui %9 : i1 to i32
    %c0_i32_9 = arith.constant 0 : i32
    %11 = arith.cmpi ne, %10, %c0_i32_9 : i32
    scf.if %11 {
      %c0_10 = arith.constant 0 : index
      %c0_11 = arith.constant 0 : index
      %12 = vector.load %arg7[%c0_10, %c0_11] : memref<16x96xf32, #tpu.memory_space<vmem>>, vector<16x96xf32>
      %c0_12 = arith.constant 0 : index
      %c0_13 = arith.constant 0 : index
      %13 = vector.load %arg5[%c0_12, %c0_13] : memref<1x96xf32, #tpu.memory_space<vmem>>, vector<1x96xf32>
      %14 = vector.broadcast %13 : vector<1x96xf32> to vector<16x96xf32>
      %15 = arith.addf %12, %14 : vector<16x96xf32>
      %16 = arith.truncf %15 : vector<16x96xf32> to vector<16x96xbf16>
      %c0_14 = arith.constant 0 : index
      %c0_15 = arith.constant 0 : index
      %17 = vector.load %arg6[%c0_14, %c0_15] : memref<16x96xbf16, #tpu.memory_space<vmem>>, vector<16x96xbf16>
      tpu.vector_store %arg6[%c0_14, %c0_15], %16 {strides = array<i32>} : memref<16x96xbf16, #tpu.memory_space<vmem>>, vector<16x96xbf16>,
    } else {
    }
    return
  }
  func.func @transform_0(%arg0: i32, %arg1: i32, %arg2: i32) -> (i32, i32) {
    %c0_i32 = arith.constant 0 : i32
    return %arg0, %arg2 : i32, i32
  }
  func.func @transform_1(%arg0: i32, %arg1: i32, %arg2: i32) -> (i32, i32) {
    %c0_i32 = arith.constant 0 : i32
    return %arg2, %arg1 : i32, i32
  }
  func.func @transform_2(%arg0: i32, %arg1: i32, %arg2: i32) -> (i32, i32) {
    %c0_i32 = arith.constant 0 : i32
    %c0_i32_0 = arith.constant 0 : i32
    return %c0_i32, %arg1 : i32, i32
  }
  func.func @transform_3(%arg0: i32, %arg1: i32, %arg2: i32) -> (i32, i32) {
    %c0_i32 = arith.constant 0 : i32
    return %arg0, %arg1 : i32, i32
  }
}

module attributes {stable_mosaic.version = 11 : i64} {
  func.func @kernel(%arg0: i32, %arg1: i32, %arg2: memref<1x8x96xbf16, #tpu.memory_space<vmem>>, %arg3: memref<32x32xbf16, #tpu.memory_space<vmem>>, %arg4: memref<1x32xf32, #tpu.memory_space<vmem>>, %arg5: memref<1x8x32xf32, #tpu.memory_space<vmem>>, %arg6: memref<8x32xbf16, #tpu.memory_space<vmem>>) attributes {dimension_semantics = [#tpu.dimension_semantics<parallel>, #tpu.dimension_semantics<parallel>], iteration_bounds = array<i64: 2, 1>, scalar_prefetch = 0 : i64, scratch_operands = 1 : i64, tpu.core_type = #tpu.core_type<tc>, window_params = [{transform_indices = @transform_0, window_bounds = array<i64: 1, 8, 96>}, {pipeline_mode = #tpu.pipeline_mode<synchronous>, transform_indices = @transform_1, window_bounds = array<i64: 32, 32>}, {pipeline_mode = #tpu.pipeline_mode<synchronous>, transform_indices = @transform_2, window_bounds = array<i64: 1, 32>}, {transform_indices = @transform_3, window_bounds = array<i64: 1, 8, 32>}]} {
    %c8_i32 = arith.constant 8 : i32
    %0 = arith.muli %arg1, %c8_i32 : i32
    %1 = tpu.assume_multiple %0, 8 : i32
    %c0 = arith.constant 0 : index
    %2 = arith.index_cast %1 : i32 to index
    %c0_0 = arith.constant 0 : index
    %3 = vector.load %arg2[%c0, %2, %c0_0] : memref<1x8x96xbf16, #tpu.memory_space<vmem>>, vector<1x8x8xbf16>
    %4 = vector.shape_cast %3 : vector<1x8x8xbf16> to vector<8x8xbf16>
    %c0_1 = arith.constant 0 : index
    %c0_2 = arith.constant 0 : index
    %c32 = arith.constant 32 : index
    %5 = vector.load %arg2[%c0_1, %c0_2, %c32] : memref<1x8x96xbf16, #tpu.memory_space<vmem>>, vector<1x8x8xbf16>
    %6 = vector.shape_cast %5 : vector<1x8x8xbf16> to vector<8x8xbf16>
    %c0_3 = arith.constant 0 : index
    %c0_4 = arith.constant 0 : index
    %c64 = arith.constant 64 : index
    %7 = vector.load %arg2[%c0_3, %c0_4, %c64] : memref<1x8x96xbf16, #tpu.memory_space<vmem>>, vector<1x8x8xbf16>
    %8 = vector.shape_cast %7 : vector<1x8x8xbf16> to vector<8x8xbf16>
    %cst = arith.constant dense<0.000000e+00> : vector<8x8xf32>
    %9 = tpu.matmul %4, %6, %cst {dimension_numbers = #tpu.dot_dimension_numbers<[1], [1], [0], [0], [0, 0, 1, 0], [], []>} : vector<8x8xbf16>, vector<8x8xbf16>, vector<8x8xf32> -> vector<8x8xf32>
    %cst_5 = arith.constant dense<0xFF800000> : vector<8xf32>
    %10 = vector.multi_reduction <maximumf>, %9, %cst_5 [1] : vector<8x8xf32> to vector<8xf32>
    %11 = vector.shape_cast %10 : vector<8xf32> to vector<8x1xf32>
    %12 = vector.broadcast %11 : vector<8x1xf32> to vector<8x8xf32>
    %13 = arith.subf %9, %12 : vector<8x8xf32>
    %14 = math.exp %13 : vector<8x8xf32>
    %cst_6 = arith.constant dense<0.000000e+00> : vector<8xf32>
    %15 = vector.multi_reduction <add>, %14, %cst_6 [1] : vector<8x8xf32> to vector<8xf32>
    %16 = vector.shape_cast %15 : vector<8xf32> to vector<8x1xf32>
    %17 = tpu.reciprocal %16 {approx = true} : vector<8x1xf32> -> vector<8x1xf32>
    %cst_7 = arith.constant 0.176776692 : f32
    %18 = vector.broadcast %cst_7 : f32 to vector<8x1xf32>
    %19 = arith.mulf %17, %18 : vector<8x1xf32>
    %20 = vector.broadcast %19 : vector<8x1xf32> to vector<8x8xf32>
    %21 = arith.mulf %14, %20 : vector<8x8xf32>
    %22 = arith.truncf %21 : vector<8x8xf32> to vector<8x8xbf16>
    %cst_8 = arith.constant dense<0.000000e+00> : vector<8x8xf32>
    %23 = tpu.matmul %22, %8, %cst_8 {dimension_numbers = #tpu.dot_dimension_numbers<[1], [0], [0], [1], [0, 0, 1, 1], [], []>} : vector<8x8xbf16>, vector<8x8xbf16>, vector<8x8xf32> -> vector<8x8xf32>
    %24 = arith.truncf %23 : vector<8x8xf32> to vector<8x8xbf16>
    %c0_9 = arith.constant 0 : index
    %c0_10 = arith.constant 0 : index
    %25 = vector.load %arg6[%c0_9, %c0_10] : memref<8x32xbf16, #tpu.memory_space<vmem>>, vector<8x8xbf16>
    tpu.vector_store %arg6[%c0_9, %c0_10], %24 {strides = array<i32>} : memref<8x32xbf16, #tpu.memory_space<vmem>>, vector<8x8xbf16>,
    %c0_11 = arith.constant 0 : index
    %26 = arith.index_cast %1 : i32 to index
    %c8 = arith.constant 8 : index
    %27 = vector.load %arg2[%c0_11, %26, %c8] : memref<1x8x96xbf16, #tpu.memory_space<vmem>>, vector<1x8x8xbf16>
    %28 = vector.shape_cast %27 : vector<1x8x8xbf16> to vector<8x8xbf16>
    %c0_12 = arith.constant 0 : index
    %c0_13 = arith.constant 0 : index
    %c40 = arith.constant 40 : index
    %29 = vector.load %arg2[%c0_12, %c0_13, %c40] : memref<1x8x96xbf16, #tpu.memory_space<vmem>>, vector<1x8x8xbf16>
    %30 = vector.shape_cast %29 : vector<1x8x8xbf16> to vector<8x8xbf16>
    %c0_14 = arith.constant 0 : index
    %c0_15 = arith.constant 0 : index
    %c72 = arith.constant 72 : index
    %31 = vector.load %arg2[%c0_14, %c0_15, %c72] : memref<1x8x96xbf16, #tpu.memory_space<vmem>>, vector<1x8x8xbf16>
    %32 = vector.shape_cast %31 : vector<1x8x8xbf16> to vector<8x8xbf16>
    %cst_16 = arith.constant dense<0.000000e+00> : vector<8x8xf32>
    %33 = tpu.matmul %28, %30, %cst_16 {dimension_numbers = #tpu.dot_dimension_numbers<[1], [1], [0], [0], [0, 0, 1, 0], [], []>} : vector<8x8xbf16>, vector<8x8xbf16>, vector<8x8xf32> -> vector<8x8xf32>
    %cst_17 = arith.constant dense<0xFF800000> : vector<8xf32>
    %34 = vector.multi_reduction <maximumf>, %33, %cst_17 [1] : vector<8x8xf32> to vector<8xf32>
    %35 = vector.shape_cast %34 : vector<8xf32> to vector<8x1xf32>
    %36 = vector.broadcast %35 : vector<8x1xf32> to vector<8x8xf32>
    %37 = arith.subf %33, %36 : vector<8x8xf32>
    %38 = math.exp %37 : vector<8x8xf32>
    %cst_18 = arith.constant dense<0.000000e+00> : vector<8xf32>
    %39 = vector.multi_reduction <add>, %38, %cst_18 [1] : vector<8x8xf32> to vector<8xf32>
    %40 = vector.shape_cast %39 : vector<8xf32> to vector<8x1xf32>
    %41 = tpu.reciprocal %40 {approx = true} : vector<8x1xf32> -> vector<8x1xf32>
    %cst_19 = arith.constant 0.176776692 : f32
    %42 = vector.broadcast %cst_19 : f32 to vector<8x1xf32>
    %43 = arith.mulf %41, %42 : vector<8x1xf32>
    %44 = vector.broadcast %43 : vector<8x1xf32> to vector<8x8xf32>
    %45 = arith.mulf %38, %44 : vector<8x8xf32>
    %46 = arith.truncf %45 : vector<8x8xf32> to vector<8x8xbf16>
    %cst_20 = arith.constant dense<0.000000e+00> : vector<8x8xf32>
    %47 = tpu.matmul %46, %32, %cst_20 {dimension_numbers = #tpu.dot_dimension_numbers<[1], [0], [0], [1], [0, 0, 1, 1], [], []>} : vector<8x8xbf16>, vector<8x8xbf16>, vector<8x8xf32> -> vector<8x8xf32>
    %48 = arith.truncf %47 : vector<8x8xf32> to vector<8x8xbf16>
    %c0_21 = arith.constant 0 : index
    %c8_22 = arith.constant 8 : index
    %49 = vector.load %arg6[%c0_21, %c8_22] : memref<8x32xbf16, #tpu.memory_space<vmem>>, vector<8x8xbf16>
    tpu.vector_store %arg6[%c0_21, %c8_22], %48 {strides = array<i32>} : memref<8x32xbf16, #tpu.memory_space<vmem>>, vector<8x8xbf16>,
    %c0_23 = arith.constant 0 : index
    %50 = arith.index_cast %1 : i32 to index
    %c16 = arith.constant 16 : index
    %51 = vector.load %arg2[%c0_23, %50, %c16] : memref<1x8x96xbf16, #tpu.memory_space<vmem>>, vector<1x8x8xbf16>
    %52 = vector.shape_cast %51 : vector<1x8x8xbf16> to vector<8x8xbf16>
    %c0_24 = arith.constant 0 : index
    %c0_25 = arith.constant 0 : index
    %c48 = arith.constant 48 : index
    %53 = vector.load %arg2[%c0_24, %c0_25, %c48] : memref<1x8x96xbf16, #tpu.memory_space<vmem>>, vector<1x8x8xbf16>
    %54 = vector.shape_cast %53 : vector<1x8x8xbf16> to vector<8x8xbf16>
    %c0_26 = arith.constant 0 : index
    %c0_27 = arith.constant 0 : index
    %c80 = arith.constant 80 : index
    %55 = vector.load %arg2[%c0_26, %c0_27, %c80] : memref<1x8x96xbf16, #tpu.memory_space<vmem>>, vector<1x8x8xbf16>
    %56 = vector.shape_cast %55 : vector<1x8x8xbf16> to vector<8x8xbf16>
    %cst_28 = arith.constant dense<0.000000e+00> : vector<8x8xf32>
    %57 = tpu.matmul %52, %54, %cst_28 {dimension_numbers = #tpu.dot_dimension_numbers<[1], [1], [0], [0], [0, 0, 1, 0], [], []>} : vector<8x8xbf16>, vector<8x8xbf16>, vector<8x8xf32> -> vector<8x8xf32>
    %cst_29 = arith.constant dense<0xFF800000> : vector<8xf32>
    %58 = vector.multi_reduction <maximumf>, %57, %cst_29 [1] : vector<8x8xf32> to vector<8xf32>
    %59 = vector.shape_cast %58 : vector<8xf32> to vector<8x1xf32>
    %60 = vector.broadcast %59 : vector<8x1xf32> to vector<8x8xf32>
    %61 = arith.subf %57, %60 : vector<8x8xf32>
    %62 = math.exp %61 : vector<8x8xf32>
    %cst_30 = arith.constant dense<0.000000e+00> : vector<8xf32>
    %63 = vector.multi_reduction <add>, %62, %cst_30 [1] : vector<8x8xf32> to vector<8xf32>
    %64 = vector.shape_cast %63 : vector<8xf32> to vector<8x1xf32>
    %65 = tpu.reciprocal %64 {approx = true} : vector<8x1xf32> -> vector<8x1xf32>
    %cst_31 = arith.constant 0.176776692 : f32
    %66 = vector.broadcast %cst_31 : f32 to vector<8x1xf32>
    %67 = arith.mulf %65, %66 : vector<8x1xf32>
    %68 = vector.broadcast %67 : vector<8x1xf32> to vector<8x8xf32>
    %69 = arith.mulf %62, %68 : vector<8x8xf32>
    %70 = arith.truncf %69 : vector<8x8xf32> to vector<8x8xbf16>
    %cst_32 = arith.constant dense<0.000000e+00> : vector<8x8xf32>
    %71 = tpu.matmul %70, %56, %cst_32 {dimension_numbers = #tpu.dot_dimension_numbers<[1], [0], [0], [1], [0, 0, 1, 1], [], []>} : vector<8x8xbf16>, vector<8x8xbf16>, vector<8x8xf32> -> vector<8x8xf32>
    %72 = arith.truncf %71 : vector<8x8xf32> to vector<8x8xbf16>
    %c0_33 = arith.constant 0 : index
    %c16_34 = arith.constant 16 : index
    %73 = vector.load %arg6[%c0_33, %c16_34] : memref<8x32xbf16, #tpu.memory_space<vmem>>, vector<8x8xbf16>
    tpu.vector_store %arg6[%c0_33, %c16_34], %72 {strides = array<i32>} : memref<8x32xbf16, #tpu.memory_space<vmem>>, vector<8x8xbf16>,
    %c0_35 = arith.constant 0 : index
    %74 = arith.index_cast %1 : i32 to index
    %c24 = arith.constant 24 : index
    %75 = vector.load %arg2[%c0_35, %74, %c24] : memref<1x8x96xbf16, #tpu.memory_space<vmem>>, vector<1x8x8xbf16>
    %76 = vector.shape_cast %75 : vector<1x8x8xbf16> to vector<8x8xbf16>
    %c0_36 = arith.constant 0 : index
    %c0_37 = arith.constant 0 : index
    %c56 = arith.constant 56 : index
    %77 = vector.load %arg2[%c0_36, %c0_37, %c56] : memref<1x8x96xbf16, #tpu.memory_space<vmem>>, vector<1x8x8xbf16>
    %78 = vector.shape_cast %77 : vector<1x8x8xbf16> to vector<8x8xbf16>
    %c0_38 = arith.constant 0 : index
    %c0_39 = arith.constant 0 : index
    %c88 = arith.constant 88 : index
    %79 = vector.load %arg2[%c0_38, %c0_39, %c88] : memref<1x8x96xbf16, #tpu.memory_space<vmem>>, vector<1x8x8xbf16>
    %80 = vector.shape_cast %79 : vector<1x8x8xbf16> to vector<8x8xbf16>
    %cst_40 = arith.constant dense<0.000000e+00> : vector<8x8xf32>
    %81 = tpu.matmul %76, %78, %cst_40 {dimension_numbers = #tpu.dot_dimension_numbers<[1], [1], [0], [0], [0, 0, 1, 0], [], []>} : vector<8x8xbf16>, vector<8x8xbf16>, vector<8x8xf32> -> vector<8x8xf32>
    %cst_41 = arith.constant dense<0xFF800000> : vector<8xf32>
    %82 = vector.multi_reduction <maximumf>, %81, %cst_41 [1] : vector<8x8xf32> to vector<8xf32>
    %83 = vector.shape_cast %82 : vector<8xf32> to vector<8x1xf32>
    %84 = vector.broadcast %83 : vector<8x1xf32> to vector<8x8xf32>
    %85 = arith.subf %81, %84 : vector<8x8xf32>
    %86 = math.exp %85 : vector<8x8xf32>
    %cst_42 = arith.constant dense<0.000000e+00> : vector<8xf32>
    %87 = vector.multi_reduction <add>, %86, %cst_42 [1] : vector<8x8xf32> to vector<8xf32>
    %88 = vector.shape_cast %87 : vector<8xf32> to vector<8x1xf32>
    %89 = tpu.reciprocal %88 {approx = true} : vector<8x1xf32> -> vector<8x1xf32>
    %cst_43 = arith.constant 0.176776692 : f32
    %90 = vector.broadcast %cst_43 : f32 to vector<8x1xf32>
    %91 = arith.mulf %89, %90 : vector<8x1xf32>
    %92 = vector.broadcast %91 : vector<8x1xf32> to vector<8x8xf32>
    %93 = arith.mulf %86, %92 : vector<8x8xf32>
    %94 = arith.truncf %93 : vector<8x8xf32> to vector<8x8xbf16>
    %cst_44 = arith.constant dense<0.000000e+00> : vector<8x8xf32>
    %95 = tpu.matmul %94, %80, %cst_44 {dimension_numbers = #tpu.dot_dimension_numbers<[1], [0], [0], [1], [0, 0, 1, 1], [], []>} : vector<8x8xbf16>, vector<8x8xbf16>, vector<8x8xf32> -> vector<8x8xf32>
    %96 = arith.truncf %95 : vector<8x8xf32> to vector<8x8xbf16>
    %c0_45 = arith.constant 0 : index
    %c24_46 = arith.constant 24 : index
    %97 = vector.load %arg6[%c0_45, %c24_46] : memref<8x32xbf16, #tpu.memory_space<vmem>>, vector<8x8xbf16>
    tpu.vector_store %arg6[%c0_45, %c24_46], %96 {strides = array<i32>} : memref<8x32xbf16, #tpu.memory_space<vmem>>, vector<8x8xbf16>,
    %c0_47 = arith.constant 0 : index
    %c0_48 = arith.constant 0 : index
    %98 = vector.load %arg6[%c0_47, %c0_48] : memref<8x32xbf16, #tpu.memory_space<vmem>>, vector<8x32xbf16>
    %c0_49 = arith.constant 0 : index
    %c0_50 = arith.constant 0 : index
    %99 = vector.load %arg3[%c0_49, %c0_50] : memref<32x32xbf16, #tpu.memory_space<vmem>>, vector<32x32xbf16>
    %cst_51 = arith.constant dense<0.000000e+00> : vector<8x32xf32>
    %100 = tpu.matmul %98, %99, %cst_51 {dimension_numbers = #tpu.dot_dimension_numbers<[1], [0], [0], [1], [0, 0, 1, 1], [], []>} : vector<8x32xbf16>, vector<32x32xbf16>, vector<8x32xf32> -> vector<8x32xf32>
    %c0_52 = arith.constant 0 : index
    %c0_53 = arith.constant 0 : index
    %101 = vector.load %arg4[%c0_52, %c0_53] : memref<1x32xf32, #tpu.memory_space<vmem>>, vector<1x32xf32>
    %102 = vector.broadcast %101 : vector<1x32xf32> to vector<8x32xf32>
    %103 = arith.addf %100, %102 : vector<8x32xf32>
    %c0_54 = arith.constant 0 : index
    %c0_55 = arith.constant 0 : index
    %c0_56 = arith.constant 0 : index
    %104 = vector.load %arg5[%c0_54, %c0_55, %c0_56] : memref<1x8x32xf32, #tpu.memory_space<vmem>>, vector<1x8x32xf32>
    %105 = vector.shape_cast %104 : vector<1x8x32xf32> to vector<8x32xf32>
    %106 = vector.shape_cast %103 : vector<8x32xf32> to vector<1x8x32xf32>
    tpu.vector_store %arg5[%c0_54, %c0_55, %c0_56], %106 {strides = array<i32>} : memref<1x8x32xf32, #tpu.memory_space<vmem>>, vector<1x8x32xf32>,
    return
  }
  func.func @transform_0(%arg0: i32, %arg1: i32) -> (i32, i32, i32) {
    %c0_i32 = arith.constant 0 : i32
    %c0_i32_0 = arith.constant 0 : i32
    %c0_i32_1 = arith.constant 0 : i32
    return %arg0, %c0_i32, %c0_i32_0 : i32, i32, i32
  }
  func.func @transform_1(%arg0: i32, %arg1: i32) -> (i32, i32) {
    %c0_i32 = arith.constant 0 : i32
    %c0_i32_0 = arith.constant 0 : i32
    %c0_i32_1 = arith.constant 0 : i32
    return %c0_i32, %c0_i32_0 : i32, i32
  }
  func.func @transform_2(%arg0: i32, %arg1: i32) -> (i32, i32) {
    %c0_i32 = arith.constant 0 : i32
    %c0_i32_0 = arith.constant 0 : i32
    %c0_i32_1 = arith.constant 0 : i32
    return %c0_i32, %c0_i32_0 : i32, i32
  }
  func.func @transform_3(%arg0: i32, %arg1: i32) -> (i32, i32, i32) {
    %c0_i32 = arith.constant 0 : i32
    %c0_i32_0 = arith.constant 0 : i32
    return %arg0, %arg1, %c0_i32 : i32, i32, i32
  }
}

</mosaic_0001>

<bundles_post_ra>
// kernel: multi_head_attention.2
= control target key start
LH: loop header
LB: loop body
LE: loop exit
PB: predicated region body
PF: predicated region fallthrough
CT: control target
= control target key end

     0   :  { %vm19_vm0 = vcmask 785408   ;;  %v108_v1 = vmov 0.0   ;;  %vm47_vm1 = vcmask 261120   ;;  %vm83_vm2 = vcmask 781312   ;;  %s151_s1 = inlined_call_operand.vmem [shape: bf16[32,96], index: 1, kind: input, shape index: {}]   ;;  %s152_s2 = inlined_call_operand.vmem [shape: f32[1,96], index: 2, kind: input, shape index: {}]   ;;  %s153_s0 = inlined_call_operand.vmem [shape: bf16[16,32], index: 0, kind: input, shape index: {}]   ;;  %s154_s3 = inlined_call_operand.vmem [shape: bf16[16,96], index: 3, kind: output, shape index: {}]  }
   0x1   :  { %v105_v0 = vld [vmem:[%s151_s1 + $0x8] sm:$0xff]  ;;  %20 = vst.msk [vmem:[#allocation2] sm:$0xff] %vm19_vm0, %v108_v1  ;;  %v104_v2 = vld [vmem:[%s151_s1] sm:$0xff] }
   0x2   :  { %21 = vst.msk [vmem:[#allocation2 + $0x8] sm:$0xff] %vm19_vm0, %v108_v1  ;;  %57 = vmatpush.bf16.msra.mxu0 %v105_v0  ;;  %v103_v3 = vld [vmem:[%s153_s0] sm:$0xff] }
   0x3   :  { %v107_v8 = vld [vmem:[%s152_s2] ss:$0 sm:$0xff] }
   0x6   :  { %58 = vmatpush.bf16.msra.mxu0 %v104_v2 }
   0x8   :  { %v22_v4 = vld [vmem:[#allocation2] sm:$0xff] }
   0x9   :  { %102 = vmatmul.msk.bf16.vlgmr.msra.gmra.mxu0 %vm47_vm1, %v103_v3  ;;  %v23_v7 = vld [vmem:[#allocation2 + $0x8] sm:$0xff] }
  0x86   :  { %v60_v5 = vpop.f32.mrf.mxu0 }
  0x87   :  { %v65_v6 = vadd.f32 %v60_v5, %v22_v4 }
  0x89   :  { %68 = vst.msk [vmem:[#allocation2] sm:$0xff] %vm19_vm0, %v65_v6 }
  0x8e   :  { %v62_v9 = vpop.f32.mrf.mxu0 }
  0x8f   :  { %v66_v10 = vadd.f32 %v62_v9, %v23_v7 }
  0x90   :  { %v73_v11 = vld [vmem:[#allocation2] sm:$0xff] }
  0x91   :  { %v79_v12 = vadd.f32 %v107_v8, %v73_v11  ;;  %69 = vst.msk [vmem:[#allocation2 + $0x8] sm:$0xff] %vm19_vm0, %v66_v10 }
  0x93   :  { %v81_v13 = vpack.c.bf16 %v79_v12, %v79_v12 }
  0x95   :  { %84 = vst.msk [vmem:[%s154_s3] sm:$0xf] %vm83_vm2, %v81_v13 }
  0x98   :  { %v74_v14 = vld [vmem:[#allocation2 + $0x8] sm:$0xff] }
  0x99   :  { %v80_v15 = vadd.f32 %v107_v8, %v74_v14 }
  0x9b   :  { %v82_v16 = vpack.c.bf16 %v80_v15, %v80_v15 }
  0x9d   :  { %85 = vst.msk [vmem:[%s154_s3 + $0x4] sm:$0xf] %vm83_vm2, %v82_v16 }

// kernel: multi_head_attention.3
= control target key start
LH: loop header
LB: loop body
LE: loop exit
PB: predicated region body
PF: predicated region fallthrough
CT: control target
= control target key end

     0   :  { %8 = vsyncpa [#allocation4], 0  ;;  %s975_s0 = inlined_call_operand.vmem [shape: bf16[2,8,96], index: 0, kind: input, shape index: {}]   ;;  %s976_s1 = inlined_call_operand.vmem [shape: bf16[32,32], index: 1, kind: input, shape index: {}]   ;;  %s977_s2 = inlined_call_operand.vmem [shape: f32[1,32], index: 2, kind: input, shape index: {}]   ;;  %s978_s3 = inlined_call_operand.hbm [shape: f32[2,8,32], index: 3, kind: output, shape index: {}]  }
   0x1   :  { %10 = vsyncpa [#allocation4 + $0x1], 0  ;;  %s823_s12 = smov 0   ;;  %s825_s13 = smov 0  }
   0x2   :  { %s827_s14 = smov 0   ;;  %s829_s15 = smov 0  }
   0x3   :  { %s831_s16 = smov 0   ;;  %s833_s17 = smov 0  }
   0x4 LB: > { %s593_s18 = sadd.s32 4294967295, %s787_s17   ;;  %s594_s19 = sadd.s32 4294967294, %s787_s17   ;;  %s787_s17 = sphi %s833_s17, %s16_s17   ;;  %s783_s16 = sphi %s831_s16, %s985_s16   ;;  %s779_s15 = sphi %s829_s15, %s984_s15   ;;  %s775_s14 = sphi %s827_s14, %s983_s14   ;;  %s771_s13 = sphi %s825_s13, %s982_s13   ;;  %s767_s12 = sphi %s823_s12, %s981_s12  }
   0x5   : > { %s28_s20 = sadd.s32 1, %s783_s16  ;;  %s105_s21 = sadd.s32 1, %s775_s14 }
   0x6   : > { %p30_p0 = scmp.ge.s32.totalorder %s28_s20, 2  ;;  %p115_p1 = scmp.ne.s32.totalorder %s775_s14, %s771_s13 }
   0x7   : > { %p116_p2 = scmp.eq.s32.totalorder %s593_s18, 1  ;;  %p121_p3 = scmp.ne.s32.totalorder %s771_s13, %s767_s12 }
   0x8   : > { %s987_s20 = smov (%p30_p0, %s28_s20), 0  ;;  %p122_p5 = scmp.eq.s32.totalorder %s594_s19, 1 }
   0x9   : > { %p863_p4 = por %p116_p2, %p115_p1  ;;  %s100_s23 = ssub.s32 %s783_s16, %s987_s20 }
   0xa   : > { %p597_p6 = scmp.ge.s32.totalorder %s787_s17, 1  ;;  %p103_p7 = scmp.eq.s32.totalorder %s100_s23, 0 }
   0xb   : > { %p870_p8 = por %p122_p5, %p121_p3  ;;  %p153_p9 = scmp.lt.s32.totalorder %s787_s17, 3 }
   0xc   : > { %s876_s25 = scalar_select %p103_p7, %s775_s14, %s105_s21  }
   0xd   : > { %p154_p10 = pnand %p597_p6, %p153_p9 }
   0xe   : > { %p176_p11 = scmp.lt.s32.totalorder (!%p154_p10), %s779_s15, 1  ;;  %s789_s4 = smov (!%p154_p10), 96  }
   0xf   : > { %157 = sbr.rel (%p154_p10) target bundleno = 1335 (0x537), region = 32  ;;  %s790_s5 = smov (!%p154_p10), 88  }
  0x10   : > { %s791_s6 = smov (!%p154_p10), 120   ;;  %s792_s7 = smov (!%p154_p10), 64  }
  0x11   : > { %s793_s8 = smov (!%p154_p10), 80   ;;  %s794_s9 = smov (!%p154_p10), 72  }
  0x12   : > { %s795_s10 = smov (!%p154_p10), 112   ;;  %s796_s11 = smov (!%p154_p10), 104  }
  0x13   : > { %s797_s18 = smov (!%p154_p10), 56   ;;  %s798_s19 = smov (!%p154_p10), 48  }
  0x14   : > { %s177_s26 = scalar_select %p176_p11, %s779_s15, 1  ;;  %vm193_vm0 = vcmask 64512   ;;  %vm231_vm1 = vcmask 1043456   ;;  %vm249_vm2 = vcmask 60416   ;;  %vm321_vm3 = vcmask 126016  }
  0x15   : > { %s799_s21 = smov 40   ;;  %s800_s23 = smov 8   ;;  %vm393_vm4 = vcmask 191616   ;;  %vm465_vm5 = vcmask 257216   ;;  %vm488_vm6 = vcmask 261120  }
  0x16   : > { %s599_s27 = sshll.u32 %s177_s26, 2  ;;  %s801_s26 = smov 16  }
  0x17   : > { %s883_s30 = scalar_lea.vmem %s975_s0, %s599_s27  ;;  %s802_s27 = smov 24  }
  0x18   : > { %v187_v0 = vld [vmem:[%s883_s30] sm:$0xf] }
  0x19   : > { %v189_v1 = vunpack.c.l.b16 %v187_v0  ;;  %v186_v5 = vld [vmem:[%s883_s30] sm:$0xf] }
  0x1a   : > { %v252_v6 = vld [vmem:[%s883_s30] sm:$0xf] }
  0x1b   : > { %v190_v2 = vpack.c.b16 %v189_v1, %v189_v1  ;;  %v259_v7 = vunpack.c.l.b16 %v252_v6  ;;  %v251_v9 = vld [vmem:[%s883_s30] sm:$0xf] }
  0x1c   : > { %v254_v10 = vunpack.c.l.b16 %v251_v9  ;;  %v324_v21 = vld [vmem:[%s883_s30] sm:$0xf] }
  0x1d   : > { %191 = vrot.lane.b32.xlu0 %v190_v2, %s789_s4  ;;  %v890_v8 = vpack.c.b16 %v259_v7, %v259_v7  ;;  %v331_v22 = vunpack.c.l.b16 %v324_v21  ;;  %v396_v23 = vld [vmem:[%s883_s30] sm:$0xf] }
  0x1e   : > { %v255_v11 = vpack.c.b16 %v254_v10, %v254_v10  ;;  %v403_v26 = vunpack.c.l.b16 %v396_v23  ;;  %v323_v29 = vld [vmem:[%s883_s30] sm:$0xf] }
  0x1f   : > { %261 = vrot.lane.b32.xlu1 %v890_v8, %s790_s5  ;;  %v899_v24 = vpack.c.b16 %v331_v22, %v331_v22  ;;  %v326_v30 = vunpack.c.l.b16 %v323_v29  ;;  %v395_v32 = vld [vmem:[%s883_s30] sm:$0xf]  ;;  %s173_s5 = sand.u32 1, %s771_s13   ;;  %s729_s30 = scalar_lea.hbm %s978_s3, 16 }
  0x20   : > { %256 = vrot.lane.b32.xlu2 %v255_v11, %s791_s6  ;;  %v903_v28 = vpack.c.b16 %v403_v26, %v403_v26  ;;  %v398_v33 = vunpack.c.l.b16 %v395_v32  ;;  %s618_s6 = sshll.u32 %s779_s15, 3 }
  0x21   : > { %v327_v31 = vpack.c.b16 %v326_v30, %v326_v30 }
  0x22   : > { %v399_v34 = vpack.c.b16 %v398_v33, %v398_v33 }
  0x28   : > { %226 = vrot.lane.b32.xlu2 %v190_v2, %s792_s7  ;;  %s598_s7 = sshll.u32 %s173_s5, 3 }
  0x30   : > { %333 = vrot.lane.b32.xlu2 %v899_v24, %s793_s8 }
  0x38   : > { %405 = vrot.lane.b32.xlu2 %v903_v28, %s794_s9 }
  0x40   : > { %328 = vrot.lane.b32.xlu2 %v327_v31, %s795_s10  ;;  %s518_s10 = scalar_lea.hbm %s978_s3, %s618_s6 }
  0x7a   : > { %v257_v17 = vpop.permute.xlu2 %256 }
  0x82   : > { %v227_v35 = vpop.permute.xlu2 %226 }
  0x83   : > { %v233_v36 = vsel %vm231_vm1, %v227_v35, 0 }
  0x84   : > { %242 = vmatpush.bf16.msra.mxu1 %v233_v36 }
  0x8a   : > { %v334_v37 = vpop.permute.xlu2 %333 }
  0x8b   : > { %v339_v40 = vsel %vm193_vm0, %v334_v37, 0 }
  0x8c   : > { %348 = vmatpush.bf16.xpose.msrb.mxu1 %v339_v40 }
  0x8f   : > { %v192_v3 = vpop.permute.xlu0 %191 }
  0x90   : > { %v198_v4 = vsel %vm193_vm0, %v192_v3, 0 }
  0x91   : > { %207 = vmatpush.bf16.xpose.msra.mxu0 %v198_v4  ;;  %v262_v15 = vpop.permute.xlu1 %261 }
  0x92   : > { %v267_v16 = vsel %vm193_vm0, %v262_v15, 0  ;;  %v406_v41 = vpop.permute.xlu2 %405 }
  0x93   : > { %276 = vmatpush.bf16.xpose.msra.mxu2 %v267_v16  ;;  %v411_v42 = vsel %vm193_vm0, %v406_v41, 0 }
  0x98   : > { %600 = vmatmul.msk.bf16.vlgmr.msra.gmra.mxu0 %vm193_vm0, %v186_v5 }
  0x99   : > { %420 = vmatpush.bf16.xpose.msrb.mxu0 %v411_v42  ;;  %v622_v42 = vld [vmem:[%s976_s1 + $0x8] sm:$0xff] }
  0x9a   : > { %602 = vmatmul.msk.bf16.vlgmr.msra.gmra.mxu2 %vm193_vm0, %v257_v17  ;;  %v329_v50 = vpop.permute.xlu2 %328 }
 0x115   : > { %v209_v12 = vpop.f32.mrf.mxu0 }
 0x116   : > { %v213_v13 = vsel %vm193_vm0, %v209_v12, -inf }
 0x117   : > { %214 = vmax.xlane.f32.xlu0 %v213_v13 }
 0x11d   : > { %v211_v14 = vpop.f32.mrf.mxu0  ;;  %v278_v38 = vpop.f32.mrf.mxu2 }
 0x11e   : > { %v282_v39 = vsel %vm193_vm0, %v278_v38, -inf }
 0x11f   : > { %283 = vmax.xlane.f32.xlu2 %v282_v39 }
 0x125   : > { %v280_v43 = vpop.f32.mrf.mxu2 }
 0x126   : > { %v621_v43 = vld [vmem:[%s976_s1] sm:$0xff] }
 0x18a   : > { %v215_v18 = vpop.xlane.xlu0 %214 }
 0x18b   : > { %v216_v19 = vsub.f32 %v209_v12, %v215_v18 }
 0x18d   : > { %v217_v20 = vmul.f32 1.442695, %v216_v19 }
 0x18f   : > { %693 = vpow2.f32 %v217_v20 }
 0x192   : > { %v284_v51 = vpop.xlane.xlu2 %283 }
 0x193   : > { %v285_v54 = vsub.f32 %v278_v38, %v284_v51 }
 0x195   : > { %v694_v25 = vpop.eup %693  ;;  %v286_v55 = vmul.f32 1.442695, %v285_v54 }
 0x196   : > { %v219_v27 = vsel %vm193_vm0, %v694_v25, 0.0 }
 0x197   : > { %220 = vadd.xlane.f32.xlu1 %v219_v27 }
 0x1b0   : > { %400 = vrot.lane.b32.xlu1 %v399_v34, %s796_s11 }
 0x20a   : > { %v221_v44 = vpop.xlane.xlu1 %220 }
 0x20b   : > { %695 = vrcp.f32 %v221_v44 }
 0x20c   : > { %697 = vpow2.f32 %v286_v55 }
 0x211   : > { %v696_v45 = vpop.eup %695 }
 0x212   : > { %v223_v46 = vmul.f32 0.17677669, %v696_v45  ;;  %v698_v60 = vpop.eup %697 }
 0x213   : > { %v288_v63 = vsel %vm193_vm0, %v698_v60, 0.0 }
 0x214   : > { %v224_v47 = vmul.f32 %v694_v25, %v223_v46 }
 0x216   : > { %v225_v48 = vpack.c.bf16 %v224_v47, %v224_v47  ;;  %v692_v47 = vld [vmem:[%s977_s2] ss:$0 sm:$0xff] }
 0x218   : > { %601 = vmatmul.msk.bf16.vlgmr.msra.gmra.mxu1 %vm193_vm0, %v225_v48 }
 0x219   : > { %498 = vmatpush.bf16.msra.mxu1 %v622_v42 }
 0x21d   : > { %499 = vmatpush.bf16.msra.mxu1 %v621_v43 }
 0x222   : > { %v401_v49 = vpop.permute.xlu1 %400 }
 0x223   : > { %606 = vmatmul.msk.bf16.vlgmr.msrb.gmra.mxu0 %vm193_vm0, %v401_v49 }
 0x228   : > { %604 = vmatmul.msk.bf16.vlgmr.msrb.gmra.mxu1 %vm193_vm0, %v329_v50 }
 0x295   : > { %v244_v52 = vpop.f32.mrf.mxu1 }
 0x296   : > { %v248_v53 = vpack.c.bf16 %v244_v52, %v244_v52 }
 0x298   : > { %250 = vst.msk [vmem:[#allocation2] sm:$0xf] %vm249_vm2, %v248_v53 }
 0x29d   : > { %v246_v56 = vpop.f32.mrf.mxu1 }
 0x2a0   : > { %v422_v57 = vpop.f32.mrf.mxu0 }
 0x2a1   : > { %v426_v58 = vsel %vm193_vm0, %v422_v57, -inf }
 0x2a2   : > { %427 = vmax.xlane.f32.xlu0 %v426_v58 }
 0x2a5   : > { %v350_v59 = vpop.f32.mrf.mxu1 }
 0x2a6   : > { %v354_v61 = vsel %vm193_vm0, %v350_v59, -inf }
 0x2a7   : > { %355 = vmax.xlane.f32.xlu1 %v354_v61 }
 0x2a8   : > { %v424_v62 = vpop.f32.mrf.mxu0 }
 0x2aa   : > { %289 = vadd.xlane.f32.xlu0 %v288_v63 }
 0x2ad   : > { %v352_v0 = vpop.f32.mrf.mxu1 }
 0x2be   : > { %295 = vrot.lane.b32.xlu0 %v890_v8, %s797_s18 }
 0x2c6   : > { %367 = vrot.lane.b32.xlu0 %v899_v24, %s798_s19  ;;  %s175_s19 = scalar_lea.vmem [#allocation3], %s598_s7 }
 0x315   : > { %v428_v1 = vpop.xlane.xlu0 %427 }
 0x316   : > { %v429_v2 = vsub.f32 %v422_v57, %v428_v1 }
 0x318   : > { %v430_v3 = vmul.f32 1.442695, %v429_v2 }
 0x31a   : > { %699 = vpow2.f32 %v430_v3  ;;  %v356_v4 = vpop.xlane.xlu1 %355 }
 0x31b   : > { %v357_v5 = vsub.f32 %v350_v59, %v356_v4 }
 0x31d   : > { %v358_v6 = vmul.f32 1.442695, %v357_v5  ;;  %v290_v7 = vpop.xlane.xlu0 %289 }
 0x31f   : > { %701 = vpow2.f32 %v358_v6 }
 0x320   : > { %v700_v9 = vpop.eup %699  ;;  %703 = vrcp.f32 %v290_v7 }
 0x321   : > { %v432_v10 = vsel %vm193_vm0, %v700_v9, 0.0 }
 0x322   : > { %433 = vadd.xlane.f32.xlu1 %v432_v10 }
 0x325   : > { %v702_v11 = vpop.eup %701 }
 0x326   : > { %v360_v8 = vsel %vm193_vm0, %v702_v11, 0.0  ;;  %v704_v12 = vpop.eup %703 }
 0x327   : > { %361 = vadd.xlane.f32.xlu2 %v360_v8  ;;  %v292_v13 = vmul.f32 0.17677669, %v704_v12 }
 0x329   : > { %v293_v14 = vmul.f32 %v698_v60, %v292_v13 }
 0x32b   : > { %v294_v17 = vpack.c.bf16 %v293_v14, %v293_v14 }
 0x330   : > { %v296_v15 = vpop.permute.xlu0 %295 }
 0x331   : > { %v301_v16 = vsel %vm231_vm1, %v296_v15, 0 }
 0x332   : > { %310 = vmatpush.bf16.msra.mxu3 %v301_v16 }
 0x335   : > { %603 = vmatmul.msk.bf16.vlgmr.msra.gmra.mxu3 %vm193_vm0, %v294_v17 }
 0x338   : > { %v368_v18 = vpop.permute.xlu0 %367 }
 0x339   : > { %v373_v19 = vsel %vm231_vm1, %v368_v18, 0 }
 0x33a   : > { %382 = vmatpush.bf16.msrb.mxu3 %v373_v19 }
 0x33f   : > { %439 = vrot.lane.b32.xlu2 %v903_v28, %s799_s21  ;;  %s520_s21 = sshll.u32 %s175_s19, 4  ;;  %s521_s21 = int_to_ptr.vmem [resolvable:$true] %s520_s21 }
 0x395   : > { %v434_v20 = vpop.xlane.xlu1 %433 }
 0x396   : > { %705 = vrcp.f32 %v434_v20 }
 0x39a   : > { %v362_v21 = vpop.xlane.xlu2 %361 }
 0x39b   : > { %707 = vrcp.f32 %v362_v21 }
 0x39c   : > { %v706_v22 = vpop.eup %705 }
 0x39d   : > { %v436_v23 = vmul.f32 0.17677669, %v706_v22 }
 0x39f   : > { %v437_v25 = vmul.f32 %v700_v9, %v436_v23 }
 0x3a1   : > { %v708_v24 = vpop.eup %707  ;;  %v438_v31 = vpack.c.bf16 %v437_v25, %v437_v25 }
 0x3a2   : > { %v364_v26 = vmul.f32 0.17677669, %v708_v24  ;;  %v440_v27 = vpop.permute.xlu2 %439 }
 0x3a3   : > { %v445_v29 = vsel %vm231_vm1, %v440_v27, 0 }
 0x3a4   : > { %v365_v30 = vmul.f32 %v702_v11, %v364_v26  ;;  %454 = vmatpush.bf16.msrb.mxu2 %v445_v29 }
 0x3a6   : > { %v366_v28 = vpack.c.bf16 %v365_v30, %v365_v30 }
 0x3a7   : > { %607 = vmatmul.msk.bf16.vlgmr.msrb.gmra.mxu2 %vm193_vm0, %v438_v31 }
 0x3a8   : > { %605 = vmatmul.msk.bf16.vlgmr.msrb.gmra.mxu3 %vm193_vm0, %v366_v28 }
 0x3b8   : > { %v312_v32 = vpop.f32.mrf.mxu3 }
 0x3b9   : > { %v316_v33 = vpack.c.bf16 %v312_v32, %v312_v32 }
 0x3bb   : > { %318 = vrot.lane.b32.xlu1 %v316_v33, %s800_s23  ;;  %s522_s23 = sshll.u32 %s518_s10, 4  ;;  %s523_s23 = int_to_ptr.hbm [resolvable:$true] %s522_s23 }
 0x3bc   : > { %s723_s15 = sshra.s32 %s523_s23, 4  ;;  %s724_s15 = int_to_ptr.hbm [resolvable:$true] %s723_s15 }
 0x3bd   : > { %p730_p1 = scmp.lt.s32.totalorder %s724_s15, %s978_s3 }
 0x3c0   : > { %v314_v34 = vpop.f32.mrf.mxu3 }
 0x42a   : > { %v456_v35 = vpop.f32.mrf.mxu2 }
 0x42b   : > { %v384_v36 = vpop.f32.mrf.mxu3  ;;  %v460_v41 = vpack.c.bf16 %v456_v35, %v456_v35 }
 0x42c   : > { %v388_v37 = vpack.c.bf16 %v384_v36, %v384_v36 }
 0x42d   : > { %v319_v38 = vpop.permute.xlu1 %318 }
 0x42e   : > { %322 = vst.msk [vmem:[#allocation2] sm:$0xf] %vm321_vm3, %v319_v38  ;;  %390 = vrot.lane.b32.xlu0 %v388_v37, %s801_s26  ;;  %s507_s26 = scalar_lea.sflag [#allocation4], %s173_s5 }
 0x432   : > { %v458_v39 = vpop.f32.mrf.mxu2 }
 0x433   : > { %v386_v40 = vpop.f32.mrf.mxu3 }
 0x436   : > { %462 = vrot.lane.b32.xlu0 %v460_v41, %s802_s27  ;;  %s725_s27 = scalar_lea.hbm %s724_s15, 8 }
 0x437   : > { %p726_p12 = scmp.ne.s32.totalorder %s724_s15, %s725_s27  ;;  %p731_p2 = scmp.lt.s32.totalorder %s729_s30, %s725_s27 }
 0x439   : > { %p727_p13 = pnand %p726_p12, %p863_p4  ;;  %p732_p3 = por %p731_p2, %p730_p1 }
 0x43b   : > { %p728_p0 = pneg %p727_p13 }
 0x43d   : > { %p733_p5 = pnand %p732_p3, %p728_p0 }
 0x4a0   : > { %v391_v44 = vpop.permute.xlu0 %390 }
 0x4a1   : > { %394 = vst.msk [vmem:[#allocation2] sm:$0xf] %vm393_vm4, %v391_v44 }
 0x4a8   : > { %v463_v45 = vpop.permute.xlu0 %462 }
 0x4a9   : > { %466 = vst.msk [vmem:[#allocation2] sm:$0xf] %vm465_vm5, %v463_v45 }
 0x4b0   : > { %v467_v46 = vld [vmem:[#allocation2] sm:$0xf] }
 0x4b1   : > { %616 = vmatmul.msk.bf16.vlgmr.msra.gmra.mxu1 %vm488_vm6, %v467_v46 }
 0x52e   : > { %v501_v48 = vpop.f32.mrf.mxu1 }
 0x52f   : > { %v502_v49 = vadd.f32 %v692_v47, %v501_v48 }
 0x531   : > { %505 = vst.msk [vmem:[%s175_s19] sm:$0xff] %vm488_vm6, %v502_v49 }
 0x532   : > { %736 = shalt.err (!%p733_p5)
}
 0x533   : > { %623 = dma.vmem_to_hbm [thread:$0]  (%p863_p4), %s521_s21, 128, %s523_s23, %s507_s26  }
 0x536   : > { %v503_v50 = vpop.f32.mrf.mxu1 }
 0x537 PF: > { %p629_p6 = scmp.ge.s32.totalorder %s787_s17, 2  ;;  %s534_s5 = sand.u32 1, %s767_s12  }
 0x538   : > { %s535_s7 = scalar_lea.sflag [#allocation4], %s534_s5 }
 0x539   : > { %p626_p7 = pnand %p629_p6, %p870_p8 }
 0x53b   : > { %p627_p9 = pneg %p626_p7 }
 0x53d   : > { %762 = dma.done.wait (%p627_p9), %s535_s7, 128  }
 0x53e   : > { %764 = vsyncadd (%p627_p9), %s535_s7, 4294967168  ;;  %s16_s17 = sadd.s32 1, %s787_s17   ;;  %s981_s12 = smov %s771_s13 }
 0x53f   : > { %p13_p10 = scmp.ge.s32.totalorder %s16_s17, 4   ;;  %s982_s13 = smov %s775_s14 }
 0x540   : > { %s983_s14 = smov %s876_s25  ;;  %s984_s15 = smov %s783_s16 }
 0x541   : > { %s985_s16 = smov %s987_s20  ;;  %15 = sbr.rel (!%p13_p10) target bundleno = 4 (0x4), region = 68 }
 0x546   :  { %541 = vsyncpa [#allocation4], 1 }
 0x547   :  { %543 = vsyncpa [#allocation4 + $0x1], 1 }

</bundles_post_ra>
